<compile_context>
chip_gen: v7x
topology: tpu7x:2x2x1
jax: 0.10.0
libtpu: 0.0.40
codegen_flags: <defaults>
</compile_context>

<pallas_src>
import functools

import jax
import jax.numpy as jnp
from jax.experimental import pallas as pl
from jax.experimental.pallas import tpu as pltpu


def _mlp_softmax_kernel(x_ref, w1_ref, b1_ref, w2_ref, b2_ref, o_ref):
    # x_ref : (4, TB)   batch on lanes
    # w1_ref: (10, 4), b1_ref: (10, 1)
    # w2_ref: (2, 10), b2_ref: (2, 1)
    # o_ref : (2, TB)
    x = x_ref[...]

    # fc1 + ReLU  (f32 accumulate; bias broadcasts along lanes)
    h = jnp.dot(w1_ref[...], x, preferred_element_type=jnp.float32) + b1_ref[...]
    h = jnp.maximum(h, 0.0)

    # fc2 -> (2, TB) logits
    logits = jnp.dot(w2_ref[...], h, preferred_element_type=jnp.float32) + b2_ref[...]

    # Two-class softmax as elementwise math on the two rows (no XLU reduction,
    # no VALU divide: exp + approx reciprocal run on the EUP slot).
    l0 = logits[0:1, :]
    l1 = logits[1:2, :]
    m = jnp.maximum(l0, l1)
    e0 = jnp.exp(l0 - m)
    e1 = jnp.exp(l1 - m)
    s = e0 + e1
    inv = pl.reciprocal(s, approx=True)
    # Two cheap Newton steps restore full f32 accuracy of the approx reciprocal.
    inv = inv * (2.0 - s * inv)
    inv = inv * (2.0 - s * inv)

    o_ref[...] = jnp.concatenate([e0 * inv, e1 * inv], axis=0).astype(o_ref.dtype)


def net_forward(x, w1, b1, w2, b2, *, block_b=8192):
    """Pallas forward pass matching PyTorch Net.forward.

    Args:
      x : (B, 4) float32
      w1: (10, 4) float32  (PyTorch fc1.weight layout, used as-is)
      b1: (10,)   float32
      w2: (2, 10) float32  (PyTorch fc2.weight layout, used as-is)
      b2: (2,)    float32
      block_b: max batch-tile width (lane axis); multiple of 128.
    Returns:
      (B, 2) float32 softmax probabilities.
    """
    B = x.shape[0]
    in_dim = w1.shape[1]
    hid = w1.shape[0]
    out_dim = w2.shape[0]

    # Batch on lanes; biases as column vectors for lane broadcast.
    xt = x.T                      # (4, B)
    b1c = b1.reshape(hid, 1)      # (10, 1)
    b2c = b2.reshape(out_dim, 1)  # (2, 1)

    # Lane-dense tile: multiple of 128, sized conservatively for v7x VMEM.
    TB = min(block_b, pl.next_power_of_2(max(B, 128)))
    n_blocks = pl.cdiv(B, TB)
    Bp = n_blocks * TB
    if Bp != B:
        xt = jnp.pad(xt, ((0, 0), (0, Bp - B)))

    out_t = pl.pallas_call(
        _mlp_softmax_kernel,
        out_shape=jax.ShapeDtypeStruct((out_dim, Bp), jnp.float32),
        grid=(n_blocks,),
        in_specs=[
            pl.BlockSpec((in_dim, TB), lambda i: (0, i)),    # x^T tile
            pl.BlockSpec((hid, in_dim), lambda i: (0, 0)),   # W1 (resident)
            pl.BlockSpec((hid, 1), lambda i: (0, 0)),        # b1 (resident)
            pl.BlockSpec((out_dim, hid), lambda i: (0, 0)),  # W2 (resident)
            pl.BlockSpec((out_dim, 1), lambda i: (0, 0)),    # b2 (resident)
        ],
        out_specs=pl.BlockSpec((out_dim, TB), lambda i: (0, i)),
        compiler_params=pltpu.CompilerParams(
            dimension_semantics=("parallel",),  # dual-TC sharding on v7x
        ),
    )(xt, w1, b1c, w2, b2c)

    # Drop the batch padding and return the PyTorch-shaped (B, 2) result.
    return out_t[:, :B].T


def reference_forward(x, w1, b1, w2, b2):
    h = jnp.maximum(x @ w1.T + b1, 0.0)
    logits = h @ w2.T + b2
    return jax.nn.softmax(logits, axis=-1)


if __name__ == "__main__":
    key = jax.random.PRNGKey(0)
    k_x, k_w1, k_b1, k_w2, k_b2, k_x2 = jax.random.split(key, 6)

    # Deterministic synthetic parameters (matches PyTorch init intent:
    # weights ~ N(0, 0.1); biases small uniform).
    w1 = 0.1 * jax.random.normal(k_w1, (10, 4), dtype=jnp.float32)
    b1 = 0.05 * jax.random.uniform(k_b1, (10,), dtype=jnp.float32, minval=-1.0, maxval=1.0)
    w2 = 0.1 * jax.random.normal(k_w2, (2, 10), dtype=jnp.float32)
    b2 = 0.05 * jax.random.uniform(k_b2, (2,), dtype=jnp.float32, minval=-1.0, maxval=1.0)

    # Case 1: tiny batch (single grid step, padded 8 -> 128 lanes).
    B = 8
    x = jax.random.normal(k_x, (B, 4), dtype=jnp.float32)
    out = net_forward(x, w1, b1, w2, b2)
    jax.block_until_ready(out)
    ref = reference_forward(x, w1, b1, w2, b2)
    assert out.shape == (B, 2)
    assert jnp.allclose(out, ref, atol=1e-5, rtol=1e-5), "mismatch vs reference (B=8)"
    assert jnp.allclose(jnp.sum(out, axis=-1), 1.0, atol=1e-5), "softmax rows must sum to 1"

    # Case 2: multi-block grid with a remainder tile (exercises tiling + padding).
    B2 = 300
    x2 = jax.random.normal(k_x2, (B2, 4), dtype=jnp.float32)
    out2 = net_forward(x2, w1, b1, w2, b2, block_b=128)
    jax.block_until_ready(out2)
    ref2 = reference_forward(x2, w1, b1, w2, b2)
    assert out2.shape == (B2, 2)
    assert jnp.allclose(out2, ref2, atol=1e-5, rtol=1e-5), "mismatch vs reference (B=300)"
    assert jnp.allclose(jnp.sum(out2, axis=-1), 1.0, atol=1e-5), "softmax rows must sum to 1"

    print("KERNEL_OK")
</pallas_src>

<mosaic_0001>
module attributes {stable_mosaic.version = 11 : i64} {
  func.func @_mlp_softmax_kernel(%arg0: i32, %arg1: memref<4x128xf32, #tpu.memory_space<vmem>>, %arg2: memref<10x4xf32, #tpu.memory_space<vmem>>, %arg3: memref<10x1xf32, #tpu.memory_space<vmem>>, %arg4: memref<2x10xf32, #tpu.memory_space<vmem>>, %arg5: memref<2x1xf32, #tpu.memory_space<vmem>>, %arg6: memref<2x128xf32, #tpu.memory_space<vmem>>) attributes {dimension_semantics = [#tpu.dimension_semantics<parallel>], iteration_bounds = array<i64: 1>, scalar_prefetch = 0 : i64, scratch_operands = 0 : i64, tpu.core_type = #tpu.core_type<tc>, window_params = [{transform_indices = @transform_0, window_bounds = array<i64: 4, 128>}, {pipeline_mode = #tpu.pipeline_mode<synchronous>, transform_indices = @transform_1, window_bounds = array<i64: 10, 4>}, {pipeline_mode = #tpu.pipeline_mode<synchronous>, transform_indices = @transform_2, window_bounds = array<i64: 10, 1>}, {pipeline_mode = #tpu.pipeline_mode<synchronous>, transform_indices = @transform_3, window_bounds = array<i64: 2, 10>}, {pipeline_mode = #tpu.pipeline_mode<synchronous>, transform_indices = @transform_4, window_bounds = array<i64: 2, 1>}, {transform_indices = @transform_5, window_bounds = array<i64: 2, 128>}]} {
    %c0 = arith.constant 0 : index
    %c0_0 = arith.constant 0 : index
    %0 = vector.load %arg1[%c0, %c0_0] : memref<4x128xf32, #tpu.memory_space<vmem>>, vector<4x128xf32>
    %c0_1 = arith.constant 0 : index
    %c0_2 = arith.constant 0 : index
    %1 = vector.load %arg2[%c0_1, %c0_2] : memref<10x4xf32, #tpu.memory_space<vmem>>, vector<10x4xf32>
    %cst = arith.constant dense<0.000000e+00> : vector<10x128xf32>
    %2 = tpu.matmul %1, %0, %cst {dimension_numbers = #tpu.dot_dimension_numbers<[1], [0], [0], [1], [0, 0, 1, 1], [], []>} : vector<10x4xf32>, vector<4x128xf32>, vector<10x128xf32> -> vector<10x128xf32>
    %c0_3 = arith.constant 0 : index
    %c0_4 = arith.constant 0 : index
    %3 = vector.load %arg3[%c0_3, %c0_4] : memref<10x1xf32, #tpu.memory_space<vmem>>, vector<10x1xf32>
    %4 = vector.broadcast %3 : vector<10x1xf32> to vector<10x128xf32>
    %5 = arith.addf %2, %4 : vector<10x128xf32>
    %cst_5 = arith.constant 0.000000e+00 : f32
    %6 = vector.broadcast %cst_5 : f32 to vector<10x128xf32>
    %7 = arith.maximumf %5, %6 : vector<10x128xf32>
    %c0_6 = arith.constant 0 : index
    %c0_7 = arith.constant 0 : index
    %8 = vector.load %arg4[%c0_6, %c0_7] : memref<2x10xf32, #tpu.memory_space<vmem>>, vector<2x10xf32>
    %cst_8 = arith.constant dense<0.000000e+00> : vector<2x128xf32>
    %9 = tpu.matmul %8, %7, %cst_8 {dimension_numbers = #tpu.dot_dimension_numbers<[1], [0], [0], [1], [0, 0, 1, 1], [], []>} : vector<2x10xf32>, vector<10x128xf32>, vector<2x128xf32> -> vector<2x128xf32>
    %c0_9 = arith.constant 0 : index
    %c0_10 = arith.constant 0 : index
    %10 = vector.load %arg5[%c0_9, %c0_10] : memref<2x1xf32, #tpu.memory_space<vmem>>, vector<2x1xf32>
    %11 = vector.broadcast %10 : vector<2x1xf32> to vector<2x128xf32>
    %12 = arith.addf %9, %11 : vector<2x128xf32>
    %13 = vector.extract_strided_slice %12 {offsets = [0, 0], sizes = [1, 128], strides = [1, 1]} : vector<2x128xf32> to vector<1x128xf32>
    %14 = vector.extract_strided_slice %12 {offsets = [1, 0], sizes = [1, 128], strides = [1, 1]} : vector<2x128xf32> to vector<1x128xf32>
    %15 = arith.maximumf %13, %14 : vector<1x128xf32>
    %16 = arith.subf %13, %15 : vector<1x128xf32>
    %17 = math.exp %16 : vector<1x128xf32>
    %18 = arith.subf %14, %15 : vector<1x128xf32>
    %19 = math.exp %18 : vector<1x128xf32>
    %20 = arith.addf %17, %19 : vector<1x128xf32>
    %21 = tpu.reciprocal %20 {approx = true} : vector<1x128xf32> -> vector<1x128xf32>
    %22 = arith.mulf %20, %21 : vector<1x128xf32>
    %cst_11 = arith.constant 2.000000e+00 : f32
    %23 = vector.broadcast %cst_11 : f32 to vector<1x128xf32>
    %24 = arith.subf %23, %22 : vector<1x128xf32>
    %25 = arith.mulf %21, %24 : vector<1x128xf32>
    %26 = arith.mulf %20, %25 : vector<1x128xf32>
    %cst_12 = arith.constant 2.000000e+00 : f32
    %27 = vector.broadcast %cst_12 : f32 to vector<1x128xf32>
    %28 = arith.subf %27, %26 : vector<1x128xf32>
    %29 = arith.mulf %25, %28 : vector<1x128xf32>
    %30 = arith.mulf %17, %29 : vector<1x128xf32>
    %31 = arith.mulf %19, %29 : vector<1x128xf32>
    %32 = tpu.concatenate %30, %31 in 0 : vector<1x128xf32>, vector<1x128xf32> -> vector<2x128xf32>
    %c0_13 = arith.constant 0 : index
    %c0_14 = arith.constant 0 : index
    %33 = vector.load %arg6[%c0_13, %c0_14] : memref<2x128xf32, #tpu.memory_space<vmem>>, vector<2x128xf32>
    tpu.vector_store %arg6[%c0_13, %c0_14], %32 {strides = array<i32>} : memref<2x128xf32, #tpu.memory_space<vmem>>, vector<2x128xf32>,
    return
  }
  func.func @transform_0(%arg0: i32) -> (i32, i32) {
    %c0_i32 = arith.constant 0 : i32
    %c0_i32_0 = arith.constant 0 : i32
    return %c0_i32, %arg0 : i32, i32
  }
  func.func @transform_1(%arg0: i32) -> (i32, i32) {
    %c0_i32 = arith.constant 0 : i32
    %c0_i32_0 = arith.constant 0 : i32
    %c0_i32_1 = arith.constant 0 : i32
    return %c0_i32, %c0_i32_0 : i32, i32
  }
  func.func @transform_2(%arg0: i32) -> (i32, i32) {
    %c0_i32 = arith.constant 0 : i32
    %c0_i32_0 = arith.constant 0 : i32
    %c0_i32_1 = arith.constant 0 : i32
    return %c0_i32, %c0_i32_0 : i32, i32
  }
  func.func @transform_3(%arg0: i32) -> (i32, i32) {
    %c0_i32 = arith.constant 0 : i32
    %c0_i32_0 = arith.constant 0 : i32
    %c0_i32_1 = arith.constant 0 : i32
    return %c0_i32, %c0_i32_0 : i32, i32
  }
  func.func @transform_4(%arg0: i32) -> (i32, i32) {
    %c0_i32 = arith.constant 0 : i32
    %c0_i32_0 = arith.constant 0 : i32
    %c0_i32_1 = arith.constant 0 : i32
    return %c0_i32, %c0_i32_0 : i32, i32
  }
  func.func @transform_5(%arg0: i32) -> (i32, i32) {
    %c0_i32 = arith.constant 0 : i32
    %c0_i32_0 = arith.constant 0 : i32
    return %c0_i32, %arg0 : i32, i32
  }
}

</mosaic_0001>

<bundles_post_ra>
// kernel: tpu_custom_call.1
= control target key start
LH: loop header
LB: loop body
LE: loop exit
PB: predicated region body
PF: predicated region fallthrough
CT: control target
= control target key end

     0   :  { %vm43_vm0 = vcmask 1043456   ;;  %vm36_vm1 = vcmask 31744   ;;  %v320_v4 = vmov 0   ;;  %s389_s0 = inlined_call_operand.vmem [shape: f32[4,128], index: 0, kind: input, shape index: {}]   ;;  %s390_s1 = inlined_call_operand.vmem [shape: f32[10,4], index: 1, kind: input, shape index: {}]   ;;  %s391_s2 = inlined_call_operand.vmem [shape: f32[10,1], index: 2, kind: input, shape index: {}]   ;;  %s392_s3 = inlined_call_operand.vmem [shape: f32[2,10], index: 3, kind: input, shape index: {}]   ;;  %s393_s4 = inlined_call_operand.vmem [shape: f32[2,1], index: 4, kind: input, shape index: {}]   ;;  %s394_s5 = inlined_call_operand.hbm [shape: f32[2,128], index: 5, kind: output, shape index: {}]  }
   0x1   :  { %v21_v0 = vld [vmem:[%s389_s0] sm:$0xf]  ;;  %v23_v2 = vld [vmem:[%s390_s1 + $0x8] sm:$0x3]  ;;  %288 = vset.pattern.permute.xlu0 %v320_v4 }
   0x2   :  { %v22_v1 = vld [vmem:[%s390_s1] sm:$0xff]  ;;  %266 = vmatprep.subr.msk.mxu0 %vm43_vm0, %v21_v0 }
   0x3   :  { %268 = vmatprep.mubr.msk.f32.mxu0 %vm36_vm1, %v22_v1  ;;  %v24_v3 = vld [vmem:[%s391_s2] sm:$0xff]  ;;  %267 = vmatpush3.msk.msra.mxu0 %vm43_vm0, %v21_v0 }
   0x4   :  { %10 = vsyncpa [#allocation3], 0  ;;  %269 = vmatmul.mubr.msk.f32.vlgmr.msra.gmra.mrb[0].mxu0 %vm36_vm1, %v23_v2  ;;  %28 = vperm.xlu0 %288, %v24_v3   ;;  %v25_v5 = vld [vmem:[%s391_s2 + $0x8] sm:$0x3]  ;;  %v321_v6 = vmov 0.0|0.0   ;;  %vm322_vm2 = vmmov 0  }
   0x5   :  { %289 = vset.pattern.permute.xlu1 %v320_v4  ;;  %278 = vmatprep.subr.bf16.mxu1 %v321_v6  ;;  %v323_v7 = vmov 0.0   ;;  %v125_v8 = vld [vmem:[%s393_s4] sm:$0x3]  ;;  %vm135_vm3 = vcmask 1041408   ;;  %vm324_vm4 = vmmov 1   ;;  %vm131_vm6 = vcmask 80896  }
   0x6   :  { %275 = vmatprep.mubr.msk.f32.mxu1 %vm322_vm2, %v323_v7  ;;  %128 = vperm.xlu1 %289, %v125_v8   ;;  %vm280_vm5 = vmpackc.low %vm135_vm3, %vm324_vm4  ;;  %v124_v18 = vld [vmem:[%s392_s3] sm:$0x3]  ;;  %s325_s3 = smov [#allocation2]   ;;  %vm238_vm7 = vcmask 1040384  }
   0x7   :  { %s247_s4 = sshll.u32 %s325_s3, 4  ;;  %s248_s4 = int_to_ptr.vmem [resolvable:$true] %s247_s4 }
   0x8   :  { %33 = vperm.xlu0 %288, %v25_v5   ;;  %s296_s29 = scalar_lea.vmem %s248_s4, 32  ;;  %p301_p1 = scmp.lt.s32.totalorder %s248_s4, %s248_s4 }
   0x9   :  { %p297_p0 = scmp.ne.s32.totalorder %s248_s4, %s296_s29  ;;  %p302_p2 = scmp.lt.s32.totalorder %s296_s29, %s296_s29 }
   0xb   :  { %p303_p3 = por %p302_p2, %p301_p1 }
   0xd   :  { %p304_p4 = pnand %p303_p3, %p297_p0 }
  0x83   :  { %v29_v9 = vpop.permute.xlu0 %28 }
  0x85   :  { %v129_v19 = vpop.permute.xlu1 %128 }
  0x87   :  { %v34_v10 = vpop.permute.xlu0 %33 }
  0xd7   :  { %v270_v11 = vpop.f32.mrb[0].mxu0 }
  0xd8   :  { %v119_v12 = vadd.f32 %v270_v11, %v34_v10  ;;  %v113_v13 = vpop.f32.mrb[1].mxu0 }
  0xd9   :  { %v114_v14 = vadd.f32 %v113_v13, %v29_v9 }
  0xda   :  { %v123_v15 = vmax.f32 %v119_v12, 0.0 }
  0xdb   :  { %v122_v16 = vmax.f32 %v114_v14, 0.0 }
  0xdd   :  { %v279_v17 = vpack.c.bf16 %v123_v15, %v122_v16 }
  0xdf   :  { %281 = vmatpush3.bf16.msk.msra.mxu1 %vm280_vm5, %v279_v17 }
  0xe2   :  { %276 = vmatmul.mubr.msk.f32.vlgmr.msra.gmra.mrb[0].mxu1 %vm131_vm6, %v124_v18 }
 0x1b5   :  { %v205_v20 = vpop.f32.mrb[0].mxu1 }
 0x1b6   :  { %v206_v21 = vadd.f32 %v205_v20, %v129_v19  ;;  %v277_v22 = vpop.f32.mrb[1].mxu1 }
 0x1b8   :  { %v210_v23 = vrot.slane %v206_v21, 1 }
 0x1ba   :  { %v212_v24 = vmax.f32 %v206_v21, %v210_v23 }
 0x1bc   :  { %v213_v25 = vsub.f32 %v206_v21, %v212_v24  ;;  %v217_v26 = vrot.slane %v212_v24, 7 }
 0x1be   :  { %v219_v27 = vsub.f32 %v206_v21, %v217_v26  ;;  %v214_v28 = vmul.f32 1.442695, %v213_v25 }
 0x1c0   :  { %v220_v29 = vmul.f32 1.442695, %v219_v27 }
 0x1c2   :  { %290 = vpow2.f32 %v220_v29 }
 0x1c3   :  { %292 = vpow2.f32 %v214_v28 }
 0x1cc   :  { %v291_v30 = vpop.eup %290 }
 0x1cd   :  { %v223_v31 = vrot.slane %v291_v30, 1  ;;  %v293_v32 = vpop.eup %292 }
 0x1cf   :  { %v225_v33 = vadd.f32 %v293_v32, %v223_v31 }
 0x1d1   :  { %294 = vrcp.f32 %v225_v33 }
 0x1db   :  { %v295_v34 = vpop.eup %294 }
 0x1dc   :  { %v227_v35 = vmul.f32 %v295_v34, %v225_v33 }
 0x1de   :  { %v228_v36 = vsub.f32 2.0, %v227_v35 }
 0x1e0   :  { %v229_v37 = vmul.f32 %v295_v34, %v228_v36 }
 0x1e2   :  { %v230_v38 = vmul.f32 %v229_v37, %v225_v33 }
 0x1e4   :  { %v231_v39 = vsub.f32 2.0, %v230_v38 }
 0x1e6   :  { %v232_v40 = vmul.f32 %v231_v39, %v229_v37 }
 0x1e8   :  { %v235_v41 = vrot.slane %v232_v40, 7  ;;  %v233_v42 = vmul.f32 %v293_v32, %v232_v40 }
 0x1ea   :  { %v237_v43 = vmul.f32 %v291_v30, %v235_v41 }
 0x1ec   :  { %v239_v44 = vsel %vm238_vm7, %v233_v42, %v237_v43 }
 0x1ed   :  { %240 = vst [vmem:[#allocation2] sm:$0x3] %v239_v44 }
 0x1ee   :  { %307 = shalt.err (!%p304_p4)
}
 0x1ef   :  { %s308_s7 = scalar_lea.hbm %s394_s5, 32 }
 0x1f0   :  { %p309_p5 = scmp.ne.s32.totalorder %s394_s5, %s308_s7  ;;  %p312_p6 = scmp.lt.u32.totalorder %s308_s7, %s394_s5 }
 0x1f2   :  { %p314_p7 = pnand %p312_p6, %p309_p5 }
 0x1f4   :  { %317 = shalt.err (!%p314_p7)
}
 0x1f5   :  { %250 = dma.vmem_to_hbm [thread:$0]  %s248_s4, 32, %s394_s5, [#allocation3]  }
 0x1f6   :  { %318 = dma.done.wait [#allocation3], 32  }
 0x1f7   :  { %319 = vsyncadd [#allocation3], 4294967264 }
 0x1f8   :  { %254 = vsyncpa [#allocation3], 1 }

</bundles_post_ra>
